<compile_context>
chip_gen: v5e
topology: v5e:2x2
jax: 0.10.0
libtpu: 0.0.40
codegen_flags: <defaults>
</compile_context>

<pallas_src>
import jax
import jax.numpy as jnp
from jax.experimental import pallas as pl
from jax.experimental.pallas import tpu as pltpu


# ----------------------------- kernel ---------------------------------------


def _make_kernel(inv_hw):
    """inv_hw = 1 / (true, unpadded H*W) so zero-padding never biases the mean."""

    def _se_kernel(x_ref, w1t_ref, w2t_ref, o_ref):
        # x_ref / o_ref: (block_b, C, HW_pad) in the input dtype
        # w1t_ref: (C, hidden) f32, w2t_ref: (hidden, C) f32

        # ---- squeeze: global average pool over the flattened spatial dim ----
        # f32 accumulation; the convert fuses into the reduction tree instead
        # of materializing an f32 copy of the whole slab.
        pooled = jnp.sum(x_ref[...], axis=-1, dtype=jnp.float32) * inv_hw   # (Bt, C)

        # ---- excitation MLP: Linear -> SiLU -> Linear -> Sigmoid ----
        h1 = jnp.dot(pooled, w1t_ref[...],
                     preferred_element_type=jnp.float32)                     # (Bt, hidden)
        h1 = h1 * jax.nn.sigmoid(h1)                                         # SiLU
        g = jnp.dot(h1, w2t_ref[...],
                    preferred_element_type=jnp.float32)                      # (Bt, C)
        gate = jax.nn.sigmoid(g).astype(o_ref.dtype)                         # (Bt, C)

        # ---- scale: re-read x (native dtype), broadcast the gate per channel ----
        o_ref[...] = x_ref[...] * gate[:, :, None]

    return _se_kernel


# --------------------------- sizing heuristics -------------------------------


def _tpu_config():
    """Generation-aware (block_budget_bytes, vmem_limit_bytes, two_tensorcores)."""
    vmem_cap = 128 << 20
    try:
        vmem_cap = int(pltpu.get_tpu_info().vmem_capacity_bytes)
    except Exception:
        pass
    kind = ""
    try:
        kind = jax.devices()[0].device_kind.lower()
    except Exception:
        pass

    # 2-TC (megacore-style) chips: v7x-class (64 MiB VMEM per TC) or v4/v5p.
    two_tc = (vmem_cap <= (64 << 20)) or any(t in kind for t in ("v7", "v4", "v5p"))

    if vmem_cap <= (64 << 20):
        # v7x-class: 64 MiB VMEM per TensorCore -- stay well under the cap so
        # blocks + double-buffered weights + compiler scratch still fit.
        budget = 32 << 20
        limit = 48 << 20
    else:
        # v5e / v6e: 128 MiB VMEM, scoped default only 16/32 MiB -- raise it.
        budget = 40 << 20
        limit = 64 << 20
    return budget, limit, two_tc


def _pick_block_b(B, bytes_per_batch_row, *, budget_bytes, two_tensorcores):
    """Largest batch block whose 4 copies (double-buffered in + out block)
    fit the budget.  On 2-TC chips, shrink just enough for an even number of
    grid steps >= 2 so the parallel batch axis splits evenly across cores."""
    max_bt = max(1, int(budget_bytes) // (4 * int(bytes_per_batch_row)))
    block_b = min(B, max_bt)
    if two_tensorcores and B >= 2:
        steps = -(-B // block_b)           # cdiv
        if steps < 2 or (steps % 2):
            even_steps = max(2, steps + (steps % 2))
            block_b = -(-B // even_steps)  # cdiv
    return block_b


# ------------------------------ wrapper --------------------------------------


def squeeze_excitation(x, w1, w2, *, block_b=None):
    """x: (B, C, H, W); w1: (hidden, C); w2: (C, hidden). Returns (B, C, H, W)."""
    B, C, H, W = x.shape
    HW = H * W
    hidden = w1.shape[0]

    # Free, contiguous reshape to a lane-dense layout; pad the flattened
    # spatial dim to a multiple of 128 lanes so stores stay unmasked.
    HW_pad = ((HW + 127) // 128) * 128
    xf = x.reshape(B, C, HW)
    if HW_pad != HW:
        xf = jnp.pad(xf, ((0, 0), (0, 0), (0, HW_pad - HW)))

    # Weights pre-transposed and pre-cast to f32 (no per-step converts); the
    # kernel then does (Bt,C)@(C,hidden) and (Bt,hidden)@(hidden,C) directly.
    w1t = w1.T.astype(jnp.float32)   # (C, hidden)
    w2t = w2.T.astype(jnp.float32)   # (hidden, C)

    budget, vmem_limit, two_tc = _tpu_config()
    if block_b is None:
        block_b = _pick_block_b(
            B, C * HW_pad * x.dtype.itemsize,
            budget_bytes=budget, two_tensorcores=two_tc)
    block_b = int(min(block_b, B))
    grid = (pl.cdiv(B, block_b),)

    kernel = _make_kernel(1.0 / float(HW))

    out = pl.pallas_call(
        kernel,
        out_shape=jax.ShapeDtypeStruct((B, C, HW_pad), x.dtype),
        grid_spec=pl.GridSpec(
            grid=grid,
            in_specs=[
                pl.BlockSpec((block_b, C, HW_pad), lambda b: (b, 0, 0)),
                pl.BlockSpec((C, hidden), lambda b: (0, 0)),
                pl.BlockSpec((hidden, C), lambda b: (0, 0)),
            ],
            out_specs=pl.BlockSpec((block_b, C, HW_pad), lambda b: (b, 0, 0)),
        ),
        compiler_params=pltpu.CompilerParams(
            dimension_semantics=("parallel",),
            vmem_limit_bytes=vmem_limit),
    )(xf, w1t, w2t)

    if HW_pad != HW:
        out = out[:, :, :HW]
    return out.reshape(B, C, H, W)


# ------------------------------ reference ------------------------------------


def _reference(x, w1, w2):
    pooled = jnp.mean(x, axis=(2, 3))                      # (B, C)
    h1 = jax.nn.silu(pooled @ w1.T)                        # (B, hidden)
    g = jax.nn.sigmoid(h1 @ w2.T)                          # (B, C)
    return x * g[:, :, None, None]


if __name__ == "__main__":
    B, C, H, W = 2, 32, 16, 16
    shrinkage_rate = 0.25
    hidden = int(C * shrinkage_rate)                       # 8

    key = jax.random.PRNGKey(0)
    kx, k1, k2 = jax.random.split(key, 3)
    x = jax.random.normal(kx, (B, C, H, W), dtype=jnp.float32)
    # deterministic "Linear(bias=False)" weights: (out_features, in_features)
    w1 = jax.random.normal(k1, (hidden, C), dtype=jnp.float32) * (1.0 / jnp.sqrt(C))
    w2 = jax.random.normal(k2, (C, hidden), dtype=jnp.float32) * (1.0 / jnp.sqrt(hidden))

    out = squeeze_excitation(x, w1, w2)
    out = jax.block_until_ready(out)

    ref = _reference(x, w1, w2)
    assert out.shape == (B, C, H, W)
    assert jnp.allclose(out, ref, atol=1e-5, rtol=1e-5)

    print("KERNEL_OK")
</pallas_src>

<mosaic_0001>
module attributes {stable_mosaic.version = 11 : i64} {
  func.func @_se_kernel(%arg0: i32, %arg1: memref<2x32x256xf32, #tpu.memory_space<vmem>>, %arg2: memref<32x8xf32, #tpu.memory_space<vmem>>, %arg3: memref<8x32xf32, #tpu.memory_space<vmem>>, %arg4: memref<2x32x256xf32, #tpu.memory_space<vmem>>) attributes {dimension_semantics = [#tpu.dimension_semantics<parallel>], iteration_bounds = array<i64: 1>, scalar_prefetch = 0 : i64, scratch_operands = 0 : i64, tpu.core_type = #tpu.core_type<tc>, window_params = [{transform_indices = @transform_0, window_bounds = array<i64: 2, 32, 256>}, {pipeline_mode = #tpu.pipeline_mode<synchronous>, transform_indices = @transform_1, window_bounds = array<i64: 32, 8>}, {pipeline_mode = #tpu.pipeline_mode<synchronous>, transform_indices = @transform_2, window_bounds = array<i64: 8, 32>}, {transform_indices = @transform_3, window_bounds = array<i64: 2, 32, 256>}]} {
    %c0 = arith.constant 0 : index
    %c0_0 = arith.constant 0 : index
    %c0_1 = arith.constant 0 : index
    %0 = vector.load %arg1[%c0, %c0_0, %c0_1] : memref<2x32x256xf32, #tpu.memory_space<vmem>>, vector<2x32x256xf32>
    %cst = arith.constant dense<0.000000e+00> : vector<2x32xf32>
    %1 = vector.multi_reduction <add>, %0, %cst [2] : vector<2x32x256xf32> to vector<2x32xf32>
    %cst_2 = arith.constant 3.906250e-03 : f32
    %2 = vector.broadcast %cst_2 : f32 to vector<2x32xf32>
    %3 = arith.mulf %1, %2 : vector<2x32xf32>
    %c0_3 = arith.constant 0 : index
    %c0_4 = arith.constant 0 : index
    %4 = vector.load %arg2[%c0_3, %c0_4] : memref<32x8xf32, #tpu.memory_space<vmem>>, vector<32x8xf32>
    %cst_5 = arith.constant dense<0.000000e+00> : vector<2x8xf32>
    %5 = tpu.matmul %3, %4, %cst_5 {dimension_numbers = #tpu.dot_dimension_numbers<[1], [0], [0], [1], [0, 0, 1, 1], [], []>} : vector<2x32xf32>, vector<32x8xf32>, vector<2x8xf32> -> vector<2x8xf32>
    %6 = arith.negf %5 : vector<2x8xf32>
    %7 = math.exp %6 : vector<2x8xf32>
    %cst_6 = arith.constant 1.000000e+00 : f32
    %8 = vector.broadcast %cst_6 : f32 to vector<2x8xf32>
    %9 = arith.addf %8, %7 : vector<2x8xf32>
    %10 = arith.divf %8, %9 : vector<2x8xf32>
    %11 = arith.mulf %5, %10 : vector<2x8xf32>
    %c0_7 = arith.constant 0 : index
    %c0_8 = arith.constant 0 : index
    %12 = vector.load %arg3[%c0_7, %c0_8] : memref<8x32xf32, #tpu.memory_space<vmem>>, vector<8x32xf32>
    %cst_9 = arith.constant dense<0.000000e+00> : vector<2x32xf32>
    %13 = tpu.matmul %11, %12, %cst_9 {dimension_numbers = #tpu.dot_dimension_numbers<[1], [0], [0], [1], [0, 0, 1, 1], [], []>} : vector<2x8xf32>, vector<8x32xf32>, vector<2x32xf32> -> vector<2x32xf32>
    %14 = arith.negf %13 : vector<2x32xf32>
    %15 = math.exp %14 : vector<2x32xf32>
    %cst_10 = arith.constant 1.000000e+00 : f32
    %16 = vector.broadcast %cst_10 : f32 to vector<2x32xf32>
    %17 = arith.addf %16, %15 : vector<2x32xf32>
    %18 = arith.divf %16, %17 : vector<2x32xf32>
    %c0_11 = arith.constant 0 : index
    %c0_12 = arith.constant 0 : index
    %c0_13 = arith.constant 0 : index
    %19 = vector.load %arg1[%c0_11, %c0_12, %c0_13] : memref<2x32x256xf32, #tpu.memory_space<vmem>>, vector<2x32x256xf32>
    %20 = vector.shape_cast %18 : vector<2x32xf32> to vector<2x32x1xf32>
    %21 = vector.broadcast %20 : vector<2x32x1xf32> to vector<2x32x256xf32>
    %22 = arith.mulf %19, %21 : vector<2x32x256xf32>
    %c0_14 = arith.constant 0 : index
    %c0_15 = arith.constant 0 : index
    %c0_16 = arith.constant 0 : index
    %23 = vector.load %arg4[%c0_14, %c0_15, %c0_16] : memref<2x32x256xf32, #tpu.memory_space<vmem>>, vector<2x32x256xf32>
    tpu.vector_store %arg4[%c0_14, %c0_15, %c0_16], %22 {strides = array<i32>} : memref<2x32x256xf32, #tpu.memory_space<vmem>>, vector<2x32x256xf32>,
    return
  }
  func.func @transform_0(%arg0: i32) -> (i32, i32, i32) {
    %c0_i32 = arith.constant 0 : i32
    %c0_i32_0 = arith.constant 0 : i32
    %c0_i32_1 = arith.constant 0 : i32
    return %arg0, %c0_i32, %c0_i32_0 : i32, i32, i32
  }
  func.func @transform_1(%arg0: i32) -> (i32, i32) {
    %c0_i32 = arith.constant 0 : i32
    %c0_i32_0 = arith.constant 0 : i32
    %c0_i32_1 = arith.constant 0 : i32
    return %c0_i32, %c0_i32_0 : i32, i32
  }
  func.func @transform_2(%arg0: i32) -> (i32, i32) {
    %c0_i32 = arith.constant 0 : i32
    %c0_i32_0 = arith.constant 0 : i32
    %c0_i32_1 = arith.constant 0 : i32
    return %c0_i32, %c0_i32_0 : i32, i32
  }
  func.func @transform_3(%arg0: i32) -> (i32, i32, i32) {
    %c0_i32 = arith.constant 0 : i32
    %c0_i32_0 = arith.constant 0 : i32
    %c0_i32_1 = arith.constant 0 : i32
    return %arg0, %c0_i32, %c0_i32_0 : i32, i32, i32
  }
}

</mosaic_0001>

<bundles_post_ra>
// kernel: tpu_custom_call.1
= control target key start
LH: loop header
LB: loop body
LE: loop exit
PB: predicated region body
PF: predicated region fallthrough
CT: control target
= control target key end

     0   :  { %8 = vsyncpa [#allocation3], 0  ;;  %s497_s0 = inlined_call_operand.hbm [shape: f32[2,32,256], index: 0, kind: input, shape index: {}]   ;;  %s498_s1 = inlined_call_operand.vmem [shape: f32[32,8], index: 1, kind: input, shape index: {}]   ;;  %s499_s2 = inlined_call_operand.vmem [shape: f32[8,32], index: 2, kind: input, shape index: {}]   ;;  %s500_s3 = inlined_call_operand.hbm [shape: f32[2,32,256], index: 3, kind: output, shape index: {}]  }
   0x1   :  { %9 = vsyncpa [#allocation4], 0  ;;  %s14_s14 = sshll.u32 %s497_s0, 4  ;;  %s380_s15 = smov [#allocation2]   ;;  %s15_s14 = int_to_ptr.hbm [resolvable:$true] %s14_s14 }
   0x2   :  { %s16_s16 = sshll.u32 %s380_s15, 4  ;;  %s381_s17 = smov 256   ;;  %s17_s16 = int_to_ptr.vmem [resolvable:$true] %s16_s16 }
   0x3   :  { %s382_s18 = smov 16  }
   0x4   :  { %22 = dma.hbm_to_vmem [thread:$0]  %s15_s14, 2048, %s17_s16, [#allocation3], %s381_s17, %s381_s17, %s382_s18  }
   0x5   :  { %376 = dma.done.wait [#allocation3], 2048  }
   0x6   :  { %377 = vsyncadd [#allocation3], 4294965248  ;;  %v410_v0 = vld [vmem:[#allocation2 + $0x40] sm:$0xff]  ;;  %v412_v1 = vld [vmem:[#allocation2 + $0x48] sm:$0xff]  ;;  %v91_v31 = vlaneseq  ;;  %vm96_vm0 = vcmask 130112   ;;  %vm100_vm1 = vcmask 195712  }
   0x7   :  { %v414_v2 = vld [vmem:[#allocation2] sm:$0xff]  ;;  %v59_v3 = vadd.f32 %v412_v1, %v410_v0  ;;  %v418_v4 = vld [vmem:[#allocation2 + $0x8] sm:$0xff]  ;;  %v428_v9 = vld [vmem:[#allocation2 + $0x50] sm:$0xff]  ;;  %vm104_vm2 = vcmask 261312   ;;  %vm113_vm3 = vcmask 1041409   ;;  %vm115_vm4 = vcmask 261120  }
   0x8   :  { %v420_v5 = vld [vmem:[#allocation2 + $0x20] sm:$0xff]  ;;  %v422_v6 = vld [vmem:[#allocation2 + $0x28] sm:$0xff]  ;;  %v47_v7 = vadd.f32 %v418_v4, %v414_v2  ;;  %v430_v10 = vld [vmem:[#allocation2 + $0x58] sm:$0xff]  ;;  %v92_v32 = vand.u32 127, %v91_v31  ;;  %vm159_vm9 = vcmask 64512   ;;  %s290_s30 = sshll.u32 %s500_s3, 4  ;;  %s291_s30 = int_to_ptr.hbm [resolvable:$true] %s290_s30 }
   0x9   :  { %v53_v8 = vadd.f32 %v422_v6, %v420_v5  ;;  %60 = vadd.xlane.f32.xlu1 %v59_v3  ;;  %v432_v11 = vld [vmem:[#allocation2 + $0x10] sm:$0xff]  ;;  %v434_v12 = vld [vmem:[#allocation2 + $0x18] sm:$0xff]  ;;  %v436_v13 = vld [vmem:[#allocation2 + $0x60] sm:$0xff]  ;;  %v62_v15 = vadd.f32 %v430_v10, %v428_v9 }
   0xa   :  { %48 = vadd.xlane.f32.xlu0 %v47_v7  ;;  %v438_v14 = vld [vmem:[#allocation2 + $0x68] sm:$0xff]  ;;  %v50_v16 = vadd.f32 %v434_v12, %v432_v11  ;;  %v446_v18 = vld [vmem:[#allocation2 + $0x70] sm:$0xff]  ;;  %v448_v19 = vld [vmem:[#allocation2 + $0x78] sm:$0xff]  ;;  %v94_v34 = vadd.s32 4294967288, %v92_v32  ;;  %v98_v43 = vadd.s32 4294967280, %v92_v32  ;;  %v102_v47 = vadd.s32 4294967272, %v92_v32 }
   0xb   :  { %54 = vadd.xlane.f32.xlu2 %v53_v8  ;;  %v65_v17 = vadd.f32 %v438_v14, %v436_v13  ;;  %v450_v20 = vld [vmem:[#allocation2 + $0x30] sm:$0xff]  ;;  %v452_v21 = vld [vmem:[#allocation2 + $0x38] sm:$0xff]  ;;  %v68_v22 = vadd.f32 %v448_v19, %v446_v18  ;;  %v80_v26 = vld [vmem:[%s498_s1 + $0x8] sm:$0xff] }
   0xc   :  { %v56_v23 = vadd.f32 %v452_v21, %v450_v20  ;;  %v82_v24 = vld [vmem:[%s498_s1 + $0x18] sm:$0xff]  ;;  %v81_v25 = vld [vmem:[%s498_s1 + $0x10] sm:$0xff]  ;;  %v79_v27 = vld [vmem:[%s498_s1] sm:$0xff] }
   0xd   :  { %130 = vmatpush.msra.mxu0 %v82_v24  ;;  %v158_v3 = vld [vmem:[%s499_s2] sm:$0xff]  ;;  %s383_s2 = smov [#allocation5]  }
   0xe   :  { %178 = vmatpush.msra.mxu1 %v158_v3  ;;  %s288_s27 = sshll.u32 %s383_s2, 4  ;;  %s289_s27 = int_to_ptr.vmem [resolvable:$true] %s288_s27 }
   0xf   :  { %131 = vmatpush.msra.mxu0 %v81_v25 }
  0x11   :  { %63 = vadd.xlane.f32.xlu1 %v62_v15  ;;  %132 = vmatpush.msra.mxu0 %v80_v26 }
  0x12   :  { %51 = vadd.xlane.f32.xlu0 %v50_v16 }
  0x13   :  { %66 = vadd.xlane.f32.xlu2 %v65_v17  ;;  %133 = vmatpush.msra.mxu0 %v79_v27 }
  0x19   :  { %69 = vadd.xlane.f32.xlu1 %v68_v22 }
  0x1a   :  { %57 = vadd.xlane.f32.xlu0 %v56_v23 }
  0x7c   :  { %v61_v28 = vpop.xlane.xlu1 %60 }
  0x7d   :  { %v49_v29 = vpop.xlane.xlu0 %48  ;;  %v75_v39 = vmul.f32 0.00390625, %v61_v28 }
  0x7e   :  { %v55_v30 = vpop.xlane.xlu2 %54  ;;  %v71_v40 = vmul.f32 0.00390625, %v49_v29 }
  0x7f   :  { %v106_v45 = vperm.slane %v75_v39, %v92_v32  ;;  %v73_v46 = vmul.f32 0.00390625, %v55_v30 }
  0x80   :  { %v93_v48 = vperm.slane %v71_v40, %v92_v32 }
  0x81   :  { %v99_v56 = vperm.slane %v73_v46, %v98_v43 }
  0x84   :  { %v64_v33 = vpop.xlane.xlu1 %63 }
  0x85   :  { %v76_v35 = vmul.f32 0.00390625, %v64_v33  ;;  %v52_v36 = vpop.xlane.xlu0 %51  ;;  %v204_v33 = vshrl.u32 %v91_v31, 7 }
  0x86   :  { %v67_v37 = vpop.xlane.xlu2 %66  ;;  %v72_v38 = vmul.f32 0.00390625, %v52_v36 }
  0x87   :  { %v77_v41 = vmul.f32 0.00390625, %v67_v37  ;;  %v107_v42 = vperm.slane %v76_v35, %v94_v34  ;;  %311 = vset.pattern.permute.xlu2 %v204_v33  ;;  %v211_v35 = vadd.s32 8, %v204_v33 }
  0x88   :  { %v95_v44 = vperm.slane %v72_v38, %v94_v34  ;;  %v217_v34 = vadd.s32 16, %v204_v33 }
  0x89   :  { %v109_v49 = vperm.slane %v77_v41, %v98_v43  ;;  %v108_v51 = vsel %vm96_vm0, %v107_v42, %v106_v45  ;;  %312 = vset.pattern.permute.xlu0 %v211_v35 }
  0x8a   :  { %v97_v54 = vsel %vm96_vm0, %v95_v44, %v93_v48  ;;  %313 = vset.pattern.permute.xlu1 %v217_v34 }
  0x8b   :  { %v110_v59 = vsel %vm100_vm1, %v109_v49, %v108_v51  ;;  %v101_v60 = vsel %vm100_vm1, %v99_v56, %v97_v54 }
  0x8c   :  { %v70_v50 = vpop.xlane.xlu1 %69 }
  0x8d   :  { %v78_v52 = vmul.f32 0.00390625, %v70_v50  ;;  %v58_v53 = vpop.xlane.xlu0 %57  ;;  %v223_v50 = vadd.s32 24, %v204_v33 }
  0x8e   :  { %v74_v55 = vmul.f32 0.00390625, %v58_v53 }
  0x8f   :  { %v111_v57 = vperm.slane %v78_v52, %v102_v47 }
  0x90   :  { %v103_v58 = vperm.slane %v74_v55, %v102_v47 }
  0x91   :  { %v112_v61 = vsel %vm104_vm2, %v111_v57, %v110_v59 }
  0x92   :  { %v105_v62 = vsel %vm104_vm2, %v103_v58, %v101_v60 }
  0x93   :  { %v114_v63 = vsel %vm113_vm3, %v112_v61, %v105_v62 }
  0x94   :  { %303 = vmatmul.msk.f32.vlgmr.msra.gmra.mxu0 %vm115_vm4, %v114_v63 }
 0x111   :  { %v135_v7 = vpop.f32.mrf.mxu0 }
 0x112   :  { %v304_v8 = vmul.f32 -1.442695, %v135_v7 }
 0x114   :  { %320 = vpow2.f32 %v304_v8 }
 0x11a   :  { %v321_v15 = vpop.eup %320 }
 0x11b   :  { %v141_v16 = vadd.f32 1.0, %v321_v15 }
 0x11d   :  { %322 = vrcp.f32 %v141_v16  ;;  %v153_v24 = vand.u32 2147483648, %v141_v16  ;;  %v151_v26 = vand.u32 2147483647, %v141_v16  ;;  %vm147_vm6 = vweird.f32 %v141_v16 }
 0x11f   :  { %v154_v28 = vor.u32 1.1754944e-38, %v153_v24  ;;  %vm152_vm8 = vcmp.eq.f32.partialorder %v151_v26, 8.507059e+37 }
 0x123   :  { %v323_v17 = vpop.eup %322 }
 0x124   :  { %v143_v22 = vmul.f32 %v323_v17, %v141_v16  ;;  %vm148_vm5 = vweird.f32 %v323_v17 }
 0x125   :  { %vm149_vm7 = vmor %vm147_vm6, %vm148_vm5 }
 0x126   :  { %v144_v23 = vsub.f32 1.0, %v143_v22 }
 0x128   :  { %v145_v25 = vmul.f32 %v323_v17, %v144_v23 }
 0x12a   :  { %v146_v27 = vadd.f32 %v323_v17, %v145_v25 }
 0x12c   :  { %v150_v29 = vsel %vm149_vm7, %v323_v17, %v146_v27 }
 0x12d   :  { %v155_v30 = vsel %vm152_vm8, %v154_v28, %v150_v29 }
 0x12e   :  { %v157_v32 = vmul.f32 %v155_v30, %v135_v7 }
 0x130   :  { %305 = vmatmul.msk.f32.vlgmr.msra.gmra.mxu1 %vm159_vm9, %v157_v32 }
 0x1ad   :  { %v180_v36 = vpop.f32.mrf.mxu1 }
 0x1ae   :  { %v306_v37 = vmul.f32 -1.442695, %v180_v36 }
 0x1b0   :  { %324 = vpow2.f32 %v306_v37 }
 0x1b6   :  { %v325_v38 = vpop.eup %324 }
 0x1b7   :  { %v186_v39 = vadd.f32 1.0, %v325_v38 }
 0x1b9   :  { %326 = vrcp.f32 %v186_v39  ;;  %v198_v43 = vand.u32 2147483648, %v186_v39  ;;  %v196_v45 = vand.u32 2147483647, %v186_v39  ;;  %vm192_vm11 = vweird.f32 %v186_v39 }
 0x1bb   :  { %v199_v31 = vor.u32 1.1754944e-38, %v198_v43  ;;  %vm197_vm13 = vcmp.eq.f32.partialorder %v196_v45, 8.507059e+37 }
 0x1bf   :  { %v327_v40 = vpop.eup %326 }
 0x1c0   :  { %v188_v41 = vmul.f32 %v327_v40, %v186_v39  ;;  %vm193_vm10 = vweird.f32 %v327_v40 }
 0x1c1   :  { %vm194_vm12 = vmor %vm192_vm11, %vm193_vm10 }
 0x1c2   :  { %v189_v42 = vsub.f32 1.0, %v188_v41 }
 0x1c4   :  { %v190_v44 = vmul.f32 %v327_v40, %v189_v42 }
 0x1c6   :  { %v191_v46 = vadd.f32 %v327_v40, %v190_v44 }
 0x1c8   :  { %v195_v47 = vsel %vm194_vm12, %v327_v40, %v191_v46 }
 0x1c9   :  { %v200_v48 = vsel %vm197_vm13, %v199_v31, %v195_v47 }
 0x1ca   :  { %v202_v49 = vperm.slane %v200_v48, 0  ;;  %v227_v51 = vperm.slane %v200_v48, 1 }
 0x1cc   :  { %219 = vperm.xlu1 %313, %v202_v49   ;;  %213 = vperm.xlu0 %312, %v202_v49  }
 0x1cd   :  { %207 = vperm.xlu2 %311, %v202_v49  }
 0x1d4   :  { %316 = vset.pattern.permute.xlu1 %v211_v35  ;;  %319 = vset.pattern.permute.xlu0 %v223_v50 }
 0x1d5   :  { %314 = vset.pattern.permute.xlu2 %v223_v50 }
 0x1dc   :  { %238 = vperm.xlu1 %316, %v227_v51  }
 0x1dd   :  { %225 = vperm.xlu2 %314, %v202_v49  }
 0x1e4   :  { %318 = vset.pattern.permute.xlu1 %v223_v50 }
 0x1e5   :  { %315 = vset.pattern.permute.xlu2 %v204_v33 }
 0x1ec   :  { %250 = vperm.xlu1 %318, %v227_v51  }
 0x1ed   :  { %232 = vperm.xlu2 %315, %v227_v51  }
 0x1f5   :  { %317 = vset.pattern.permute.xlu2 %v217_v34 }
 0x1fd   :  { %244 = vperm.xlu2 %317, %v227_v51  }
 0x227   :  { %v208_v52 = vpop.permute.xlu2 %207 }
 0x228   :  { %v252_v53 = vmul.f32 %v208_v52, %v414_v2  ;;  %v253_v54 = vmul.f32 %v208_v52, %v418_v4 }
 0x22a   :  { %268 = vst [vmem:[#allocation5] sm:$0xff] %v252_v53 }
 0x22b   :  { %269 = vst [vmem:[#allocation5 + $0x8] sm:$0xff] %v253_v54 }
 0x237   :  { %v226_v55 = vpop.permute.xlu2 %225 }
 0x238   :  { %v258_v56 = vmul.f32 %v226_v55, %v450_v20  ;;  %v259_v57 = vmul.f32 %v226_v55, %v452_v21 }
 0x23a   :  { %274 = vst [vmem:[#allocation5 + $0x30] sm:$0xff] %v258_v56 }
 0x23b   :  { %275 = vst [vmem:[#allocation5 + $0x38] sm:$0xff] %v259_v57 }
 0x23e   :  { %v220_v58 = vpop.permute.xlu1 %219  ;;  %v214_v59 = vpop.permute.xlu0 %213 }
 0x23f   :  { %v256_v60 = vmul.f32 %v220_v58, %v420_v5  ;;  %v257_v61 = vmul.f32 %v220_v58, %v422_v6  ;;  %v254_v62 = vmul.f32 %v214_v59, %v432_v11  ;;  %v255_v2 = vmul.f32 %v214_v59, %v434_v12 }
 0x241   :  { %272 = vst [vmem:[#allocation5 + $0x20] sm:$0xff] %v256_v60 }
 0x242   :  { %273 = vst [vmem:[#allocation5 + $0x28] sm:$0xff] %v257_v61 }
 0x243   :  { %270 = vst [vmem:[#allocation5 + $0x10] sm:$0xff] %v254_v62 }
 0x244   :  { %271 = vst [vmem:[#allocation5 + $0x18] sm:$0xff] %v255_v2 }
 0x247   :  { %v233_v4 = vpop.permute.xlu2 %232 }
 0x248   :  { %v260_v20 = vmul.f32 %v233_v4, %v410_v0  ;;  %v261_v21 = vmul.f32 %v233_v4, %v412_v1 }
 0x24a   :  { %276 = vst [vmem:[#allocation5 + $0x40] sm:$0xff] %v260_v20 }
 0x24b   :  { %277 = vst [vmem:[#allocation5 + $0x48] sm:$0xff] %v261_v21 }
 0x24e   :  { %v239_v63 = vpop.permute.xlu1 %238 }
 0x24f   :  { %v262_v5 = vmul.f32 %v239_v63, %v428_v9  ;;  %v263_v6 = vmul.f32 %v239_v63, %v430_v10 }
 0x251   :  { %278 = vst [vmem:[#allocation5 + $0x50] sm:$0xff] %v262_v5 }
 0x252   :  { %279 = vst [vmem:[#allocation5 + $0x58] sm:$0xff] %v263_v6 }
 0x257   :  { %v245_v11 = vpop.permute.xlu2 %244 }
 0x258   :  { %v264_v12 = vmul.f32 %v245_v11, %v436_v13  ;;  %v265_v3 = vmul.f32 %v245_v11, %v438_v14 }
 0x25a   :  { %280 = vst [vmem:[#allocation5 + $0x60] sm:$0xff] %v264_v12 }
 0x25b   :  { %281 = vst [vmem:[#allocation5 + $0x68] sm:$0xff] %v265_v3 }
 0x25e   :  { %v251_v0 = vpop.permute.xlu1 %250 }
 0x25f   :  { %v266_v1 = vmul.f32 %v251_v0, %v446_v18  ;;  %v267_v9 = vmul.f32 %v251_v0, %v448_v19 }
 0x261   :  { %282 = vst [vmem:[#allocation5 + $0x70] sm:$0xff] %v266_v1 }
 0x262   :  { %283 = vst [vmem:[#allocation5 + $0x78] sm:$0xff] %v267_v9 }
 0x263   :  { %296 = dma.vmem_to_hbm [thread:$0]  %s289_s27, 2048, %s291_s30, [#allocation4], %s381_s17, %s381_s17, %s382_s18  }
 0x264   :  { %378 = dma.done.wait [#allocation4], 2048  }
 0x265   :  { %379 = vsyncadd [#allocation4], 4294965248 }
 0x266   :  { %301 = vsyncpa [#allocation3], 1 }
 0x267   :  { %302 = vsyncpa [#allocation4], 1 }

</bundles_post_ra>
